<compile_context>
chip_gen: v5e
topology: v5e:2x2
jax: 0.10.0
libtpu: 0.0.40
codegen_flags: <defaults>
</compile_context>

<pallas_src>
import functools

import jax
import jax.numpy as jnp
from jax.experimental import pallas as pl

NEG_INF = -1e30


def _round_up(n, m):
    return ((n + m - 1) // m) * m


def _pad2(x, shape):
    return jnp.pad(x, [(0, t - s) for s, t in zip(x.shape, shape)])


def _full_spec(shape):
    # whole array as one block, resident in VMEM, no grid
    return pl.BlockSpec(shape, lambda: (0,) * len(shape))


def gcn_fused_kernel(a_ref, x_ref, pool_ref, w1_ref, b1_ref, w2_ref, b2_ref,
                     w3l_ref, bl_ref, o_ref):
    bf = jnp.bfloat16
    a = a_ref[...]                                        # bf16 [Np, Np]

    # --- GCNConv 1: (A_hat @ X) @ W1 + b1, ReLU  (IN_CH < HID ordering) ---
    ax = jnp.dot(a, x_ref[...], preferred_element_type=jnp.float32)
    h = jnp.dot(ax.astype(bf), w1_ref[...],
                preferred_element_type=jnp.float32)
    h = jnp.maximum(h + b1_ref[...], 0.0).astype(bf)      # ReLU -> bf16 directly
    # dropout (p=0.5) -> identity in eval mode

    # --- GCNConv 2: A_hat @ (H @ W2) + b2, ReLU ---
    hw = jnp.dot(h, w2_ref[...], preferred_element_type=jnp.float32)
    h = jnp.dot(a, hw.astype(bf), preferred_element_type=jnp.float32)
    h = jnp.maximum(h + b2_ref[...], 0.0).astype(bf)      # ReLU -> bf16 directly
    # dropout -> identity in eval mode

    # --- folded GCNConv 3 + global_mean_pool + Linear ---
    # logits = ((P @ A_hat) @ H2) @ (W3 @ Wl) + (b3 @ Wl + bl)
    # P @ A_hat is computed here on the A tile already resident in VMEM.
    pa = jnp.dot(pool_ref[...], a, preferred_element_type=jnp.float32)     # [Gp, Np]
    pooled = jnp.dot(pa.astype(bf), h, preferred_element_type=jnp.float32) # [Gp, HIDp]
    logits = jnp.dot(pooled.astype(bf), w3l_ref[...],
                     preferred_element_type=jnp.float32) + bl_ref[...]     # [Gp, Cp]

    # --- log_softmax along classes (padded classes carry a -1e30 bias) ---
    m = jnp.max(logits, axis=-1, keepdims=True)
    z = logits - m
    lse = jnp.log(jnp.sum(jnp.exp(z), axis=-1, keepdims=True))
    o_ref[...] = z - lse


def prepare_params(params):
    """One-time, parameter-only prep hoisted out of the per-call path.

    Pads weights/biases to lane/sublane-dense shapes, casts weights to bf16
    and algebraically folds conv3 + global_mean_pool + Linear into a single
    weight (W3 @ Wl) and bias (b3 @ Wl + bl, NEG_INF on padded class cols).
    """
    w1, b1, w2, b2, w3, b3, wl, bl = params
    in_ch, hid = w1.shape
    c = wl.shape[1]
    in_p = _round_up(in_ch, 128)
    hid_p = _round_up(hid, 128)
    c_p = _round_up(c, 128)
    bf = jnp.bfloat16

    w1_p = _pad2(w1, (in_p, hid_p)).astype(bf)
    b1_p = _pad2(b1, (1, hid_p))
    w2_p = _pad2(w2, (hid_p, hid_p)).astype(bf)
    b2_p = _pad2(b2, (1, hid_p))

    # exact fold (pool rows sum to 1 for non-empty graphs)
    wl_p = _pad2(wl, (hid, c_p))
    w3l = (_pad2(w3, (hid_p, hid)) @ wl_p).astype(bf)      # [HIDp, Cp]
    bl_f = b3 @ wl_p + _pad2(bl, (1, c_p))                 # [1, Cp]
    class_mask = jnp.arange(c_p) < c
    bl_f = jnp.where(class_mask[None, :], bl_f, NEG_INF)

    consts = (w1_p, b1_p, w2_p, b2_p, w3l, bl_f)
    consts = jax.tree_util.tree_map(jax.device_put, consts)
    return consts


@functools.partial(jax.jit, static_argnames=("num_classes",))
def graphsage_forward(a_hat, x, pool_mat, consts, num_classes):
    w1_p, b1_p, w2_p, b2_p, w3l, bl_f = consts
    n = a_hat.shape[0]
    g = pool_mat.shape[0]
    in_p, hid_p = w1_p.shape
    c_p = w3l.shape[1]

    n_p = _round_up(n, 128)
    g_p = _round_up(g, 16)      # 16: bf16 packs 16 rows per vreg sublane tile
    bf = jnp.bfloat16

    # only input-dependent prep remains on the per-call path
    a_p = _pad2(a_hat, (n_p, n_p)).astype(bf)
    x_p = _pad2(x, (n_p, in_p)).astype(bf)
    pool_p = _pad2(pool_mat, (g_p, n_p)).astype(bf)

    operands = (a_p, x_p, pool_p, w1_p, b1_p, w2_p, b2_p, w3l, bl_f)
    in_specs = [_full_spec(op.shape) for op in operands]

    flops = 2 * (n_p * n_p * in_p        # A @ X
                 + n_p * in_p * hid_p    # (AX) @ W1
                 + n_p * hid_p * hid_p   # H @ W2
                 + n_p * n_p * hid_p     # A @ (HW2)
                 + g_p * n_p * n_p       # P @ A
                 + g_p * n_p * hid_p     # (PA) @ H2
                 + g_p * hid_p * c_p)    # pooled @ (W3 Wl)
    bytes_accessed = (sum(op.size * op.dtype.itemsize for op in operands)
                      + g_p * c_p * 4)
    cost = pl.CostEstimate(flops=flops,
                           transcendentals=g_p * c_p,
                           bytes_accessed=bytes_accessed)

    out = pl.pallas_call(
        gcn_fused_kernel,
        out_shape=jax.ShapeDtypeStruct((g_p, c_p), jnp.float32),
        in_specs=in_specs,
        out_specs=_full_spec((g_p, c_p)),
        cost_estimate=cost,
    )(*operands)
    return out[:g, :num_classes]


def build_normalized_adjacency(edge_index, num_nodes):
    """Dense GCN-normalized adjacency: D^{-1/2} (A + I) D^{-1/2}."""
    src, tgt = edge_index
    a = jnp.zeros((num_nodes, num_nodes), jnp.float32)
    # A[i, j] = 1 if there is an edge j -> i (message from source j to target i)
    a = a.at[tgt, src].set(1.0)
    a = a + jnp.eye(num_nodes, dtype=jnp.float32)          # add self loops
    deg = jnp.sum(a, axis=1)
    dinv = jnp.where(deg > 0, 1.0 / jnp.sqrt(deg), 0.0)
    return dinv[:, None] * a * dinv[None, :]


def build_mean_pool_matrix(batch, num_graphs, num_nodes):
    """P [G, N] with P[g, n] = 1/|nodes in graph g| if batch[n] == g."""
    onehot = (batch[None, :] == jnp.arange(num_graphs)[:, None]).astype(jnp.float32)
    counts = jnp.maximum(jnp.sum(onehot, axis=1, keepdims=True), 1.0)
    return onehot / counts


def reference_forward(a_hat, x, params, pool_mat):
    """Unfolded f32 reference in the original op order."""
    w1, b1, w2, b2, w3, b3, wl, bl = params
    h = jnp.maximum(a_hat @ (x @ w1) + b1, 0.0)
    h = jnp.maximum(a_hat @ (h @ w2) + b2, 0.0)
    h = a_hat @ (h @ w3) + b3
    pooled = pool_mat @ h
    logits = pooled @ wl + bl
    return jax.nn.log_softmax(logits, axis=-1)


if __name__ == "__main__":
    key = jax.random.PRNGKey(0)

    # Small synthetic graph batch, consistent with the module's forward:
    N = 32                 # total nodes (two graphs of 16 nodes each)
    G = 2                  # number of graphs in the batch
    IN_CH = 16             # in_channels (node feature dim)
    HID = 128              # hidden_channels of the original module
    OUT_CH = 4             # out_channels (num classes)

    k_x, k1, k2, k3, k4 = jax.random.split(key, 5)

    # node features
    x = jax.random.normal(k_x, (N, IN_CH), dtype=jnp.float32)

    # ring edges within each graph (bidirectional), deterministic
    edges = []
    for gi in range(G):
        base = gi * (N // G)
        n_g = N // G
        for i in range(n_g):
            a_n, b_n = base + i, base + (i + 1) % n_g
            edges.append((a_n, b_n))
            edges.append((b_n, a_n))
    edge_index = jnp.array(edges, dtype=jnp.int32).T          # [2, E]

    # batch assignment vector
    batch = jnp.repeat(jnp.arange(G, dtype=jnp.int32), N // G)

    # deterministic synthetic parameters (GCNConv weight [F_in, F_out] + bias,
    # Linear weight [H, C] + bias)
    def init_w(k, shape, scale=0.1):
        return scale * jax.random.normal(k, shape, dtype=jnp.float32)

    w1 = init_w(jax.random.fold_in(k1, 0), (IN_CH, HID))
    b1 = init_w(jax.random.fold_in(k1, 1), (1, HID))
    w2 = init_w(jax.random.fold_in(k2, 0), (HID, HID))
    b2 = init_w(jax.random.fold_in(k2, 1), (1, HID))
    w3 = init_w(jax.random.fold_in(k3, 0), (HID, HID))
    b3 = init_w(jax.random.fold_in(k3, 1), (1, HID))
    wl = init_w(jax.random.fold_in(k4, 0), (HID, OUT_CH))
    bl = init_w(jax.random.fold_in(k4, 1), (1, OUT_CH))
    params = (w1, b1, w2, b2, w3, b3, wl, bl)

    # glue: dense normalized adjacency + mean-pool matrix (plain JAX)
    a_hat = build_normalized_adjacency(edge_index, N)
    pool_mat = build_mean_pool_matrix(batch, G, N)

    # one-time parameter prep (hoisted out of the per-call path)
    consts = prepare_params(params)

    out = graphsage_forward(a_hat, x, pool_mat, consts, num_classes=OUT_CH)
    out = jax.block_until_ready(out)

    # sanity: shape + log_softmax rows exponentiate-sum to 1
    assert out.shape == (G, OUT_CH)
    row_sums = jnp.exp(out).sum(axis=1)
    assert jnp.allclose(row_sums, 1.0, atol=1e-5), row_sums

    # validate folding + padding + bf16 pipeline against unfolded f32 reference
    ref = reference_forward(a_hat, x, params, pool_mat)
    max_err = float(jnp.max(jnp.abs(out - ref)))
    assert max_err < 1e-1, (max_err, out, ref)

    print("KERNEL_OK")
</pallas_src>

<mosaic_0001>
module attributes {stable_mosaic.version = 11 : i64} {
  func.func @gcn_fused_kernel(%arg0: memref<128x128xbf16, #tpu.memory_space<vmem>>, %arg1: memref<128x128xbf16, #tpu.memory_space<vmem>>, %arg2: memref<16x128xbf16, #tpu.memory_space<vmem>>, %arg3: memref<128x128xbf16, #tpu.memory_space<vmem>>, %arg4: memref<1x128xf32, #tpu.memory_space<vmem>>, %arg5: memref<128x128xbf16, #tpu.memory_space<vmem>>, %arg6: memref<1x128xf32, #tpu.memory_space<vmem>>, %arg7: memref<128x128xbf16, #tpu.memory_space<vmem>>, %arg8: memref<1x128xf32, #tpu.memory_space<vmem>>, %arg9: memref<16x128xf32, #tpu.memory_space<vmem>>) attributes {dimension_semantics = [], scalar_prefetch = 0 : i64, scratch_operands = 0 : i64, tpu.core_type = #tpu.core_type<tc>} {
    %c0 = arith.constant 0 : index
    %c0_0 = arith.constant 0 : index
    %0 = vector.load %arg0[%c0, %c0_0] : memref<128x128xbf16, #tpu.memory_space<vmem>>, vector<128x128xbf16>
    %c0_1 = arith.constant 0 : index
    %c0_2 = arith.constant 0 : index
    %1 = vector.load %arg1[%c0_1, %c0_2] : memref<128x128xbf16, #tpu.memory_space<vmem>>, vector<128x128xbf16>
    %cst = arith.constant dense<0.000000e+00> : vector<128x128xf32>
    %2 = tpu.matmul %0, %1, %cst {dimension_numbers = #tpu.dot_dimension_numbers<[1], [0], [0], [1], [0, 0, 1, 1], [], []>} : vector<128x128xbf16>, vector<128x128xbf16>, vector<128x128xf32> -> vector<128x128xf32>
    %3 = arith.truncf %2 : vector<128x128xf32> to vector<128x128xbf16>
    %c0_3 = arith.constant 0 : index
    %c0_4 = arith.constant 0 : index
    %4 = vector.load %arg3[%c0_3, %c0_4] : memref<128x128xbf16, #tpu.memory_space<vmem>>, vector<128x128xbf16>
    %cst_5 = arith.constant dense<0.000000e+00> : vector<128x128xf32>
    %5 = tpu.matmul %3, %4, %cst_5 {dimension_numbers = #tpu.dot_dimension_numbers<[1], [0], [0], [1], [0, 0, 1, 1], [], []>} : vector<128x128xbf16>, vector<128x128xbf16>, vector<128x128xf32> -> vector<128x128xf32>
    %c0_6 = arith.constant 0 : index
    %c0_7 = arith.constant 0 : index
    %6 = vector.load %arg4[%c0_6, %c0_7] : memref<1x128xf32, #tpu.memory_space<vmem>>, vector<1x128xf32>
    %7 = vector.broadcast %6 : vector<1x128xf32> to vector<128x128xf32>
    %8 = arith.addf %5, %7 : vector<128x128xf32>
    %cst_8 = arith.constant 0.000000e+00 : f32
    %9 = vector.broadcast %cst_8 : f32 to vector<128x128xf32>
    %10 = arith.maximumf %8, %9 : vector<128x128xf32>
    %11 = arith.truncf %10 : vector<128x128xf32> to vector<128x128xbf16>
    %c0_9 = arith.constant 0 : index
    %c0_10 = arith.constant 0 : index
    %12 = vector.load %arg5[%c0_9, %c0_10] : memref<128x128xbf16, #tpu.memory_space<vmem>>, vector<128x128xbf16>
    %cst_11 = arith.constant dense<0.000000e+00> : vector<128x128xf32>
    %13 = tpu.matmul %11, %12, %cst_11 {dimension_numbers = #tpu.dot_dimension_numbers<[1], [0], [0], [1], [0, 0, 1, 1], [], []>} : vector<128x128xbf16>, vector<128x128xbf16>, vector<128x128xf32> -> vector<128x128xf32>
    %14 = arith.truncf %13 : vector<128x128xf32> to vector<128x128xbf16>
    %cst_12 = arith.constant dense<0.000000e+00> : vector<128x128xf32>
    %15 = tpu.matmul %0, %14, %cst_12 {dimension_numbers = #tpu.dot_dimension_numbers<[1], [0], [0], [1], [0, 0, 1, 1], [], []>} : vector<128x128xbf16>, vector<128x128xbf16>, vector<128x128xf32> -> vector<128x128xf32>
    %c0_13 = arith.constant 0 : index
    %c0_14 = arith.constant 0 : index
    %16 = vector.load %arg6[%c0_13, %c0_14] : memref<1x128xf32, #tpu.memory_space<vmem>>, vector<1x128xf32>
    %17 = vector.broadcast %16 : vector<1x128xf32> to vector<128x128xf32>
    %18 = arith.addf %15, %17 : vector<128x128xf32>
    %cst_15 = arith.constant 0.000000e+00 : f32
    %19 = vector.broadcast %cst_15 : f32 to vector<128x128xf32>
    %20 = arith.maximumf %18, %19 : vector<128x128xf32>
    %21 = arith.truncf %20 : vector<128x128xf32> to vector<128x128xbf16>
    %c0_16 = arith.constant 0 : index
    %c0_17 = arith.constant 0 : index
    %22 = vector.load %arg2[%c0_16, %c0_17] : memref<16x128xbf16, #tpu.memory_space<vmem>>, vector<16x128xbf16>
    %cst_18 = arith.constant dense<0.000000e+00> : vector<16x128xf32>
    %23 = tpu.matmul %22, %0, %cst_18 {dimension_numbers = #tpu.dot_dimension_numbers<[1], [0], [0], [1], [0, 0, 1, 1], [], []>} : vector<16x128xbf16>, vector<128x128xbf16>, vector<16x128xf32> -> vector<16x128xf32>
    %24 = arith.truncf %23 : vector<16x128xf32> to vector<16x128xbf16>
    %cst_19 = arith.constant dense<0.000000e+00> : vector<16x128xf32>
    %25 = tpu.matmul %24, %21, %cst_19 {dimension_numbers = #tpu.dot_dimension_numbers<[1], [0], [0], [1], [0, 0, 1, 1], [], []>} : vector<16x128xbf16>, vector<128x128xbf16>, vector<16x128xf32> -> vector<16x128xf32>
    %26 = arith.truncf %25 : vector<16x128xf32> to vector<16x128xbf16>
    %c0_20 = arith.constant 0 : index
    %c0_21 = arith.constant 0 : index
    %27 = vector.load %arg7[%c0_20, %c0_21] : memref<128x128xbf16, #tpu.memory_space<vmem>>, vector<128x128xbf16>
    %cst_22 = arith.constant dense<0.000000e+00> : vector<16x128xf32>
    %28 = tpu.matmul %26, %27, %cst_22 {dimension_numbers = #tpu.dot_dimension_numbers<[1], [0], [0], [1], [0, 0, 1, 1], [], []>} : vector<16x128xbf16>, vector<128x128xbf16>, vector<16x128xf32> -> vector<16x128xf32>
    %c0_23 = arith.constant 0 : index
    %c0_24 = arith.constant 0 : index
    %29 = vector.load %arg8[%c0_23, %c0_24] : memref<1x128xf32, #tpu.memory_space<vmem>>, vector<1x128xf32>
    %30 = vector.broadcast %29 : vector<1x128xf32> to vector<16x128xf32>
    %31 = arith.addf %28, %30 : vector<16x128xf32>
    %cst_25 = arith.constant dense<0xFF800000> : vector<16xf32>
    %32 = vector.multi_reduction <maximumf>, %31, %cst_25 [1] : vector<16x128xf32> to vector<16xf32>
    %33 = vector.shape_cast %32 : vector<16xf32> to vector<16x1xf32>
    %34 = vector.broadcast %33 : vector<16x1xf32> to vector<16x128xf32>
    %35 = arith.subf %31, %34 : vector<16x128xf32>
    %36 = math.exp %35 : vector<16x128xf32>
    %cst_26 = arith.constant dense<0.000000e+00> : vector<16xf32>
    %37 = vector.multi_reduction <add>, %36, %cst_26 [1] : vector<16x128xf32> to vector<16xf32>
    %38 = vector.shape_cast %37 : vector<16xf32> to vector<16x1xf32>
    %39 = math.log %38 : vector<16x1xf32>
    %40 = vector.broadcast %39 : vector<16x1xf32> to vector<16x128xf32>
    %41 = arith.subf %35, %40 : vector<16x128xf32>
    %c0_27 = arith.constant 0 : index
    %c0_28 = arith.constant 0 : index
    %42 = vector.load %arg9[%c0_27, %c0_28] : memref<16x128xf32, #tpu.memory_space<vmem>>, vector<16x128xf32>
    tpu.vector_store %arg9[%c0_27, %c0_28], %41 {strides = array<i32>} : memref<16x128xf32, #tpu.memory_space<vmem>>, vector<16x128xf32>,
    return
  }
}

</mosaic_0001>

<bundles_post_ra>
// kernel: graphsage_forward.1
= control target key start
LH: loop header
LB: loop body
LE: loop exit
PB: predicated region body
PF: predicated region fallthrough
CT: control target
= control target key end

     0   :  { %s1149_s1 = inlined_call_operand.vmem [shape: bf16[128,128], index: 1, kind: input, shape index: {}]   ;;  %s1150_s0 = inlined_call_operand.vmem [shape: bf16[128,128], index: 0, kind: input, shape index: {}]   ;;  %s1151_s3 = inlined_call_operand.vmem [shape: bf16[128,128], index: 3, kind: input, shape index: {}]   ;;  %s1152_s4 = inlined_call_operand.vmem [shape: f32[1,128], index: 4, kind: input, shape index: {}]   ;;  %s1153_s5 = inlined_call_operand.vmem [shape: bf16[128,128], index: 5, kind: input, shape index: {}]   ;;  %s1154_s6 = inlined_call_operand.vmem [shape: f32[1,128], index: 6, kind: input, shape index: {}]   ;;  %s1155_s2 = inlined_call_operand.vmem [shape: bf16[16,128], index: 2, kind: input, shape index: {}]   ;;  %s1156_s7 = inlined_call_operand.vmem [shape: bf16[128,128], index: 7, kind: input, shape index: {}]   ;;  %s1157_s8 = inlined_call_operand.vmem [shape: f32[1,128], index: 8, kind: input, shape index: {}]   ;;  %s1158_s9 = inlined_call_operand.vmem [shape: f32[16,128], index: 9, kind: output, shape index: {}]  }
   0x1   :  { %v881_v0 = vld [vmem:[%s1149_s1 + $0x38] sm:$0xff]  ;;  %v880_v1 = vld [vmem:[%s1149_s1 + $0x30] sm:$0xff]  ;;  %v879_v2 = vld [vmem:[%s1149_s1 + $0x28] sm:$0xff] }
   0x2   :  { %160 = vmatpush.bf16.msra.mxu0 %v881_v0  ;;  %v878_v3 = vld [vmem:[%s1149_s1 + $0x20] sm:$0xff]  ;;  %v877_v4 = vld [vmem:[%s1149_s1 + $0x18] sm:$0xff]  ;;  %v876_v5 = vld [vmem:[%s1149_s1 + $0x10] sm:$0xff] }
   0x3   :  { %v875_v6 = vld [vmem:[%s1149_s1 + $0x8] sm:$0xff]  ;;  %v874_v7 = vld [vmem:[%s1149_s1] sm:$0xff]  ;;  %v1007_v10 = vld [vmem:[%s1150_s0 + $0x10] sm:$0xff] }
   0x4   :  { %v995_v8 = vld [vmem:[%s1150_s0] sm:$0xff]  ;;  %v1001_v9 = vld [vmem:[%s1150_s0 + $0x8] sm:$0xff]  ;;  %v1013_v11 = vld [vmem:[%s1150_s0 + $0x18] sm:$0xff] }
   0x5   :  { %v1019_v12 = vld [vmem:[%s1150_s0 + $0x20] sm:$0xff]  ;;  %v889_v13 = vld [vmem:[%s1151_s3 + $0x38] sm:$0xff]  ;;  %v888_v15 = vld [vmem:[%s1151_s3 + $0x30] sm:$0xff] }
   0x6   :  { %161 = vmatpush.bf16.msra.mxu0 %v880_v1  ;;  %v1028_v14 = vld [vmem:[%s1150_s0 + $0x38] sm:$0xff]  ;;  %285 = vmatpush.bf16.msra.mxu1 %v889_v13  ;;  %v1037_v16 = vld [vmem:[%s1150_s0 + $0x30] sm:$0xff]  ;;  %v1043_v17 = vld [vmem:[%s1150_s0 + $0x28] sm:$0xff] }
   0x7   :  { %v887_v18 = vld [vmem:[%s1151_s3 + $0x28] sm:$0xff]  ;;  %v886_v19 = vld [vmem:[%s1151_s3 + $0x20] sm:$0xff]  ;;  %v885_v20 = vld [vmem:[%s1151_s3 + $0x18] sm:$0xff] }
   0x8   :  { %v884_v21 = vld [vmem:[%s1151_s3 + $0x10] sm:$0xff]  ;;  %v883_v22 = vld [vmem:[%s1151_s3 + $0x8] sm:$0xff]  ;;  %v882_v23 = vld [vmem:[%s1151_s3] sm:$0xff] }
   0x9   :  { %v897_v40 = vld [vmem:[%s1153_s5 + $0x38] sm:$0xff]  ;;  %v896_v43 = vld [vmem:[%s1153_s5 + $0x30] sm:$0xff]  ;;  %v895_v44 = vld [vmem:[%s1153_s5 + $0x28] sm:$0xff] }
   0xa   :  { %162 = vmatpush.bf16.msra.mxu0 %v879_v2  ;;  %286 = vmatpush.bf16.msra.mxu1 %v888_v15  ;;  %v894_v46 = vld [vmem:[%s1153_s5 + $0x20] sm:$0xff]  ;;  %v893_v47 = vld [vmem:[%s1153_s5 + $0x18] sm:$0xff]  ;;  %v892_v50 = vld [vmem:[%s1153_s5 + $0x10] sm:$0xff] }
   0xb   :  { %422 = vmatpush.bf16.msra.mxu2 %v897_v40  ;;  %v891_v51 = vld [vmem:[%s1153_s5 + $0x8] sm:$0xff]  ;;  %v890_v53 = vld [vmem:[%s1153_s5] sm:$0xff] }
   0xc   :  { %v907_v57 = vld [vmem:[%s1152_s4] ss:$0 sm:$0xff] }
   0xe   :  { %163 = vmatpush.bf16.msra.mxu0 %v878_v3  ;;  %287 = vmatpush.bf16.msra.mxu1 %v887_v18 }
   0xf   :  { %423 = vmatpush.bf16.msra.mxu2 %v896_v43 }
  0x12   :  { %164 = vmatpush.bf16.msra.mxu0 %v877_v4  ;;  %288 = vmatpush.bf16.msra.mxu1 %v886_v19 }
  0x13   :  { %424 = vmatpush.bf16.msra.mxu2 %v895_v44 }
  0x16   :  { %165 = vmatpush.bf16.msra.mxu0 %v876_v5  ;;  %289 = vmatpush.bf16.msra.mxu1 %v885_v20 }
  0x17   :  { %425 = vmatpush.bf16.msra.mxu2 %v894_v46 }
  0x1a   :  { %166 = vmatpush.bf16.msra.mxu0 %v875_v6  ;;  %290 = vmatpush.bf16.msra.mxu1 %v884_v21 }
  0x1b   :  { %426 = vmatpush.bf16.msra.mxu2 %v893_v47 }
  0x1e   :  { %167 = vmatpush.bf16.msra.mxu0 %v874_v7  ;;  %291 = vmatpush.bf16.msra.mxu1 %v883_v22 }
  0x1f   :  { %427 = vmatpush.bf16.msra.mxu2 %v892_v50 }
  0x21   :  { %168 = vmatmul.bf16.vlgmr.msra.gmra.mxu0 %v995_v8 }
  0x22   :  { %564 = vmatpush.bf16.msrb.mxu0 %v1028_v14  ;;  %292 = vmatpush.bf16.msra.mxu1 %v882_v23 }
  0x23   :  { %428 = vmatpush.bf16.msra.mxu2 %v891_v51 }
  0x26   :  { %565 = vmatpush.bf16.msrb.mxu0 %v1037_v16 }
  0x27   :  { %429 = vmatpush.bf16.msra.mxu2 %v890_v53 }
  0x2a   :  { %566 = vmatpush.bf16.msrb.mxu0 %v1043_v17 }
  0x2e   :  { %567 = vmatpush.bf16.msrb.mxu0 %v1019_v12 }
  0x31   :  { %173 = vmatmul.bf16.gmra.mxu0 %v1001_v9 }
  0x32   :  { %568 = vmatpush.bf16.msrb.mxu0 %v1013_v11 }
  0x36   :  { %569 = vmatpush.bf16.msrb.mxu0 %v1007_v10 }
  0x3a   :  { %570 = vmatpush.bf16.msrb.mxu0 %v1001_v9 }
  0x3e   :  { %571 = vmatpush.bf16.msrb.mxu0 %v995_v8 }
  0x41   :  { %178 = vmatmul.bf16.gmra.mxu0 %v1007_v10 }
  0x51   :  { %183 = vmatmul.bf16.gmra.mxu0 %v1013_v11 }
  0x61   :  { %188 = vmatmul.bf16.gmra.mxu0 %v1019_v12 }
  0x71   :  { %193 = vmatmul.bf16.gmra.mxu0 %v1043_v17 }
  0x81   :  { %198 = vmatmul.bf16.gmra.mxu0 %v1037_v16 }
  0x91   :  { %203 = vmatmul.bf16.gmra.mxu0 %v1028_v14 }
  0x9e   :  { %v169_v24 = vpop.f32.mrf.mxu0 }
  0xa6   :  { %v171_v25 = vpop.f32.mrf.mxu0 }
  0xa7   :  { %v209_v26 = vpack.c.bf16 %v171_v25, %v169_v24 }
  0xa9   :  { %293 = vmatmul.bf16.vlgmr.msra.gmra.mxu1 %v209_v26 }
  0xae   :  { %v174_v27 = vpop.f32.mrf.mxu0 }
  0xb6   :  { %v176_v28 = vpop.f32.mrf.mxu0 }
  0xb7   :  { %v210_v29 = vpack.c.bf16 %v176_v28, %v174_v27 }
  0xb9   :  { %298 = vmatmul.bf16.gmra.mxu1 %v210_v29 }
  0xbe   :  { %v179_v30 = vpop.f32.mrf.mxu0 }
  0xc6   :  { %v181_v31 = vpop.f32.mrf.mxu0 }
  0xc7   :  { %v211_v32 = vpack.c.bf16 %v181_v31, %v179_v30 }
  0xc9   :  { %303 = vmatmul.bf16.gmra.mxu1 %v211_v32 }
  0xce   :  { %v184_v33 = vpop.f32.mrf.mxu0 }
  0xd6   :  { %v186_v34 = vpop.f32.mrf.mxu0 }
  0xd7   :  { %v212_v35 = vpack.c.bf16 %v186_v34, %v184_v33 }
  0xd9   :  { %308 = vmatmul.bf16.gmra.mxu1 %v212_v35 }
  0xde   :  { %v189_v36 = vpop.f32.mrf.mxu0 }
  0xe6   :  { %v191_v37 = vpop.f32.mrf.mxu0 }
  0xe7   :  { %v213_v38 = vpack.c.bf16 %v191_v37, %v189_v36 }
  0xe9   :  { %313 = vmatmul.bf16.gmra.mxu1 %v213_v38 }
  0xee   :  { %v194_v39 = vpop.f32.mrf.mxu0 }
  0xf6   :  { %v196_v41 = vpop.f32.mrf.mxu0 }
  0xf7   :  { %v214_v42 = vpack.c.bf16 %v196_v41, %v194_v39 }
  0xf9   :  { %318 = vmatmul.bf16.gmra.mxu1 %v214_v42 }
  0xfe   :  { %v199_v45 = vpop.f32.mrf.mxu0 }
 0x106   :  { %v201_v48 = vpop.f32.mrf.mxu0 }
 0x107   :  { %v215_v49 = vpack.c.bf16 %v201_v48, %v199_v45 }
 0x109   :  { %323 = vmatmul.bf16.gmra.mxu1 %v215_v49 }
 0x10e   :  { %v204_v52 = vpop.f32.mrf.mxu0 }
 0x116   :  { %v206_v54 = vpop.f32.mrf.mxu0 }
 0x117   :  { %v216_v55 = vpack.c.bf16 %v206_v54, %v204_v52 }
 0x119   :  { %328 = vmatmul.bf16.gmra.mxu1 %v216_v55 }
 0x126   :  { %v294_v56 = vpop.f32.mrf.mxu1 }
 0x127   :  { %v295_v58 = vadd.f32 %v907_v57, %v294_v56 }
 0x129   :  { %v334_v61 = vmax.f32 %v295_v58, 0.0 }
 0x12e   :  { %v296_v59 = vpop.f32.mrf.mxu1 }
 0x12f   :  { %v297_v60 = vadd.f32 %v907_v57, %v296_v59 }
 0x131   :  { %v335_v62 = vmax.f32 %v297_v60, 0.0 }
 0x133   :  { %v350_v63 = vpack.c.bf16 %v335_v62, %v334_v61 }
 0x135   :  { %430 = vmatmul.bf16.vlgmr.msra.gmra.mxu2 %v350_v63 }
 0x136   :  { %v299_v0 = vpop.f32.mrf.mxu1 }
 0x137   :  { %v300_v1 = vadd.f32 %v907_v57, %v299_v0 }
 0x139   :  { %v336_v4 = vmax.f32 %v300_v1, 0.0 }
 0x13e   :  { %v301_v2 = vpop.f32.mrf.mxu1 }
 0x13f   :  { %v302_v3 = vadd.f32 %v907_v57, %v301_v2 }
 0x141   :  { %v337_v5 = vmax.f32 %v302_v3, 0.0 }
 0x143   :  { %v351_v6 = vpack.c.bf16 %v337_v5, %v336_v4 }
 0x145   :  { %435 = vmatmul.bf16.gmra.mxu2 %v351_v6 }
 0x146   :  { %v304_v7 = vpop.f32.mrf.mxu1 }
 0x147   :  { %v305_v13 = vadd.f32 %v907_v57, %v304_v7 }
 0x149   :  { %v338_v19 = vmax.f32 %v305_v13, 0.0 }
 0x14e   :  { %v306_v15 = vpop.f32.mrf.mxu1 }
 0x14f   :  { %v307_v18 = vadd.f32 %v907_v57, %v306_v15 }
 0x151   :  { %v339_v20 = vmax.f32 %v307_v18, 0.0 }
 0x153   :  { %v352_v21 = vpack.c.bf16 %v339_v20, %v338_v19 }
 0x155   :  { %440 = vmatmul.bf16.gmra.mxu2 %v352_v21 }
 0x156   :  { %v309_v22 = vpop.f32.mrf.mxu1 }
 0x157   :  { %v310_v23 = vadd.f32 %v907_v57, %v309_v22 }
 0x159   :  { %v340_v26 = vmax.f32 %v310_v23, 0.0 }
 0x15e   :  { %v311_v24 = vpop.f32.mrf.mxu1 }
 0x15f   :  { %v312_v25 = vadd.f32 %v907_v57, %v311_v24 }
 0x161   :  { %v341_v27 = vmax.f32 %v312_v25, 0.0  ;;  %v898_v25 = vld [vmem:[%s1155_s2] sm:$0xff] }
 0x162   :  { %572 = vmatmul.bf16.vlgmr.msrb.gmra.mxu0 %v898_v25 }
 0x163   :  { %v353_v28 = vpack.c.bf16 %v341_v27, %v340_v26 }
 0x165   :  { %445 = vmatmul.bf16.gmra.mxu2 %v353_v28 }
 0x166   :  { %v314_v29 = vpop.f32.mrf.mxu1 }
 0x167   :  { %v315_v30 = vadd.f32 %v907_v57, %v314_v29 }
 0x169   :  { %v342_v33 = vmax.f32 %v315_v30, 0.0 }
 0x16e   :  { %v316_v31 = vpop.f32.mrf.mxu1 }
 0x16f   :  { %v317_v32 = vadd.f32 %v907_v57, %v316_v31 }
 0x171   :  { %v343_v34 = vmax.f32 %v317_v32, 0.0 }
 0x173   :  { %v354_v35 = vpack.c.bf16 %v343_v34, %v342_v33 }
 0x175   :  { %450 = vmatmul.bf16.gmra.mxu2 %v354_v35 }
 0x176   :  { %v319_v36 = vpop.f32.mrf.mxu1 }
 0x177   :  { %v320_v37 = vadd.f32 %v907_v57, %v319_v36 }
 0x179   :  { %v344_v40 = vmax.f32 %v320_v37, 0.0 }
 0x17e   :  { %v321_v38 = vpop.f32.mrf.mxu1 }
 0x17f   :  { %v322_v39 = vadd.f32 %v907_v57, %v321_v38 }
 0x181   :  { %v345_v41 = vmax.f32 %v322_v39, 0.0 }
 0x183   :  { %v355_v42 = vpack.c.bf16 %v345_v41, %v344_v40 }
 0x185   :  { %455 = vmatmul.bf16.gmra.mxu2 %v355_v42 }
 0x186   :  { %v324_v43 = vpop.f32.mrf.mxu1 }
 0x187   :  { %v325_v44 = vadd.f32 %v907_v57, %v324_v43 }
 0x189   :  { %v346_v47 = vmax.f32 %v325_v44, 0.0 }
 0x18e   :  { %v326_v45 = vpop.f32.mrf.mxu1 }
 0x18f   :  { %v327_v46 = vadd.f32 %v907_v57, %v326_v45 }
 0x191   :  { %v347_v48 = vmax.f32 %v327_v46, 0.0 }
 0x193   :  { %v356_v49 = vpack.c.bf16 %v347_v48, %v346_v47 }
 0x195   :  { %460 = vmatmul.bf16.gmra.mxu2 %v356_v49 }
 0x196   :  { %v329_v50 = vpop.f32.mrf.mxu1 }
 0x197   :  { %v330_v51 = vadd.f32 %v907_v57, %v329_v50 }
 0x199   :  { %v348_v54 = vmax.f32 %v330_v51, 0.0 }
 0x19e   :  { %v331_v52 = vpop.f32.mrf.mxu1 }
 0x19f   :  { %v332_v53 = vadd.f32 %v907_v57, %v331_v52 }
 0x1a1   :  { %v349_v55 = vmax.f32 %v332_v53, 0.0 }
 0x1a3   :  { %v357_v56 = vpack.c.bf16 %v349_v55, %v348_v54 }
 0x1a5   :  { %465 = vmatmul.bf16.gmra.mxu2 %v357_v56 }
 0x1b8   :  { %v431_v58 = vpop.f32.mrf.mxu2 }
 0x1c0   :  { %v433_v59 = vpop.f32.mrf.mxu2 }
 0x1c1   :  { %v471_v60 = vpack.c.bf16 %v433_v59, %v431_v58 }
 0x1c8   :  { %v436_v61 = vpop.f32.mrf.mxu2 }
 0x1d0   :  { %v438_v62 = vpop.f32.mrf.mxu2 }
 0x1d1   :  { %v472_v63 = vpack.c.bf16 %v438_v62, %v436_v61 }
 0x1d8   :  { %v441_v0 = vpop.f32.mrf.mxu2 }
 0x1e0   :  { %v443_v1 = vpop.f32.mrf.mxu2 }
 0x1e1   :  { %v473_v2 = vpack.c.bf16 %v443_v1, %v441_v0  ;;  %v906_v1 = vld [vmem:[%s1156_s7 + $0x38] sm:$0xff] }
 0x1e2   :  { %662 = vmatpush.bf16.msrb.mxu2 %v906_v1 }
 0x1e8   :  { %v446_v3 = vpop.f32.mrf.mxu2 }
 0x1f0   :  { %v448_v4 = vpop.f32.mrf.mxu2 }
 0x1f1   :  { %v474_v5 = vpack.c.bf16 %v448_v4, %v446_v3  ;;  %v905_v4 = vld [vmem:[%s1156_s7 + $0x30] sm:$0xff] }
 0x1f2   :  { %663 = vmatpush.bf16.msrb.mxu2 %v905_v4 }
 0x1f8   :  { %v451_v6 = vpop.f32.mrf.mxu2 }
 0x200   :  { %v453_v7 = vpop.f32.mrf.mxu2 }
 0x201   :  { %v475_v24 = vpack.c.bf16 %v453_v7, %v451_v6 }
 0x208   :  { %v456_v13 = vpop.f32.mrf.mxu2 }
 0x210   :  { %v458_v57 = vpop.f32.mrf.mxu2 }
 0x211   :  { %v476_v23 = vpack.c.bf16 %v458_v57, %v456_v13 }
 0x218   :  { %v461_v15 = vpop.f32.mrf.mxu2 }
 0x220   :  { %v463_v18 = vpop.f32.mrf.mxu2 }
 0x221   :  { %v477_v22 = vpack.c.bf16 %v463_v18, %v461_v15  ;;  %v904_v15 = vld [vmem:[%s1156_s7 + $0x28] sm:$0xff] }
 0x222   :  { %664 = vmatpush.bf16.msrb.mxu2 %v904_v15 }
 0x228   :  { %v466_v19 = vpop.f32.mrf.mxu2 }
 0x230   :  { %v468_v20 = vpop.f32.mrf.mxu2 }
 0x231   :  { %v478_v21 = vpack.c.bf16 %v468_v20, %v466_v19 }
 0x233   :  { %483 = vmatpush.bf16.msra.mxu3 %v478_v21  ;;  %v903_v21 = vld [vmem:[%s1156_s7 + $0x20] sm:$0xff] }
 0x234   :  { %665 = vmatpush.bf16.msrb.mxu2 %v903_v21 }
 0x237   :  { %484 = vmatpush.bf16.msra.mxu3 %v477_v22 }
 0x23b   :  { %485 = vmatpush.bf16.msra.mxu3 %v476_v23  ;;  %v902_v23 = vld [vmem:[%s1156_s7 + $0x18] sm:$0xff] }
 0x23c   :  { %666 = vmatpush.bf16.msrb.mxu2 %v902_v23 }
 0x23f   :  { %486 = vmatpush.bf16.msra.mxu3 %v475_v24  ;;  %v573_v24 = vpop.f32.mrf.mxu0 }
 0x243   :  { %487 = vmatpush.bf16.msra.mxu3 %v474_v5 }
 0x247   :  { %488 = vmatpush.bf16.msra.mxu3 %v473_v2  ;;  %v575_v25 = vpop.f32.mrf.mxu0 }
 0x24b   :  { %489 = vmatpush.bf16.msra.mxu3 %v472_v63 }
 0x24f   :  { %490 = vmatpush.bf16.msra.mxu3 %v471_v60 }
 0x252   :  { %491 = vmatmul.bf16.vlgmr.msra.gmra.mxu3 %v995_v8 }
 0x262   :  { %496 = vmatmul.bf16.gmra.mxu3 %v1001_v9  ;;  %v908_v9 = vld [vmem:[%s1154_s6] ss:$0 sm:$0xff] }
 0x272   :  { %501 = vmatmul.bf16.gmra.mxu3 %v1007_v10 }
 0x282   :  { %506 = vmatmul.bf16.gmra.mxu3 %v1013_v11 }
 0x292   :  { %511 = vmatmul.bf16.gmra.mxu3 %v1019_v12 }
 0x2a2   :  { %516 = vmatmul.bf16.gmra.mxu3 %v1043_v17 }
 0x2b2   :  { %521 = vmatmul.bf16.gmra.mxu3 %v1037_v16 }
 0x2c2   :  { %526 = vmatmul.bf16.gmra.mxu3 %v1028_v14 }
 0x2d5   :  { %v492_v8 = vpop.f32.mrf.mxu3 }
 0x2d6   :  { %v493_v10 = vadd.f32 %v908_v9, %v492_v8  ;;  %v578_v8 = vpack.c.bf16 %v575_v25, %v573_v24 }
 0x2d8   :  { %v532_v12 = vmax.f32 %v493_v10, 0.0  ;;  %v900_v10 = vld [vmem:[%s1156_s7 + $0x8] sm:$0xff] }
 0x2dd   :  { %v494_v11 = vpop.f32.mrf.mxu3 }
 0x2de   :  { %v495_v26 = vadd.f32 %v908_v9, %v494_v11  ;;  %v899_v11 = vld [vmem:[%s1156_s7] sm:$0xff] }
 0x2e0   :  { %v533_v27 = vmax.f32 %v495_v26, 0.0 }
 0x2e2   :  { %v1113_v17 = vpack.c.bf16 %v533_v27, %v532_v12 }
 0x2e5   :  { %v497_v16 = vpop.f32.mrf.mxu3 }
 0x2e6   :  { %v498_v28 = vadd.f32 %v908_v9, %v497_v16 }
 0x2e8   :  { %v534_v31 = vmax.f32 %v498_v28, 0.0 }
 0x2ed   :  { %v499_v29 = vpop.f32.mrf.mxu3 }
 0x2ee   :  { %v500_v30 = vadd.f32 %v908_v9, %v499_v29 }
 0x2f0   :  { %v535_v32 = vmax.f32 %v500_v30, 0.0 }
 0x2f2   :  { %v549_v14 = vpack.c.bf16 %v535_v32, %v534_v31 }
 0x2f5   :  { %v502_v33 = vpop.f32.mrf.mxu3 }
 0x2f6   :  { %v503_v34 = vadd.f32 %v908_v9, %v502_v33 }
 0x2f8   :  { %v536_v37 = vmax.f32 %v503_v34, 0.0 }
 0x2fd   :  { %v504_v35 = vpop.f32.mrf.mxu3 }
 0x2fe   :  { %v505_v36 = vadd.f32 %v908_v9, %v504_v35 }
 0x300   :  { %v537_v38 = vmax.f32 %v505_v36, 0.0 }
 0x302   :  { %v550_v39 = vpack.c.bf16 %v537_v38, %v536_v37 }
 0x305   :  { %v507_v40 = vpop.f32.mrf.mxu3 }
 0x306   :  { %v508_v41 = vadd.f32 %v908_v9, %v507_v40 }
 0x308   :  { %v538_v44 = vmax.f32 %v508_v41, 0.0 }
 0x30d   :  { %v509_v42 = vpop.f32.mrf.mxu3 }
 0x30e   :  { %v510_v43 = vadd.f32 %v908_v9, %v509_v42 }
 0x310   :  { %v539_v45 = vmax.f32 %v510_v43, 0.0 }
 0x312   :  { %v551_v46 = vpack.c.bf16 %v539_v45, %v538_v44 }
 0x315   :  { %v512_v47 = vpop.f32.mrf.mxu3 }
 0x316   :  { %v513_v13 = vadd.f32 %v908_v9, %v512_v47 }
 0x318   :  { %v540_v20 = vmax.f32 %v513_v13, 0.0 }
 0x31d   :  { %v514_v48 = vpop.f32.mrf.mxu3 }
 0x31e   :  { %v515_v5 = vadd.f32 %v908_v9, %v514_v48 }
 0x320   :  { %v541_v18 = vmax.f32 %v515_v5, 0.0 }
 0x322   :  { %v552_v22 = vpack.c.bf16 %v541_v18, %v540_v20 }
 0x325   :  { %v517_v49 = vpop.f32.mrf.mxu3 }
 0x326   :  { %v518_v2 = vadd.f32 %v908_v9, %v517_v49 }
 0x328   :  { %v542_v57 = vmax.f32 %v518_v2, 0.0 }
 0x32d   :  { %v519_v50 = vpop.f32.mrf.mxu3 }
 0x32e   :  { %v520_v62 = vadd.f32 %v908_v9, %v519_v50 }
 0x330   :  { %v543_v6 = vmax.f32 %v520_v62, 0.0 }
 0x332   :  { %v553_v19 = vpack.c.bf16 %v543_v6, %v542_v57 }
 0x335   :  { %v522_v51 = vpop.f32.mrf.mxu3 }
 0x336   :  { %v523_v59 = vadd.f32 %v908_v9, %v522_v51 }
 0x338   :  { %v544_v3 = vmax.f32 %v523_v59, 0.0 }
 0x33d   :  { %v524_v52 = vpop.f32.mrf.mxu3 }
 0x33e   :  { %v525_v56 = vadd.f32 %v908_v9, %v524_v52 }
 0x340   :  { %v545_v63 = vmax.f32 %v525_v56, 0.0 }
 0x342   :  { %v554_v7 = vpack.c.bf16 %v545_v63, %v544_v3 }
 0x345   :  { %v527_v53 = vpop.f32.mrf.mxu3 }
 0x346   :  { %v528_v54 = vadd.f32 %v908_v9, %v527_v53 }
 0x348   :  { %v546_v60 = vmax.f32 %v528_v54, 0.0 }
 0x34d   :  { %v529_v55 = vpop.f32.mrf.mxu3 }
 0x34e   :  { %v530_v58 = vadd.f32 %v908_v9, %v529_v55  ;;  %v901_v9 = vld [vmem:[%s1156_s7 + $0x10] sm:$0xff] }
 0x34f   :  { %667 = vmatpush.bf16.msrb.mxu2 %v901_v9 }
 0x350   :  { %v547_v61 = vmax.f32 %v530_v58, 0.0 }
 0x352   :  { %v555_v0 = vpack.c.bf16 %v547_v61, %v546_v60 }
 0x353   :  { %668 = vmatpush.bf16.msrb.mxu2 %v900_v10 }
 0x354   :  { %579 = vmatpush.bf16.msrb.mxu1 %v555_v0 }
 0x357   :  { %669 = vmatpush.bf16.msrb.mxu2 %v899_v11 }
 0x358   :  { %580 = vmatpush.bf16.msrb.mxu1 %v554_v7 }
 0x35c   :  { %581 = vmatpush.bf16.msrb.mxu1 %v553_v19 }
 0x360   :  { %582 = vmatpush.bf16.msrb.mxu1 %v552_v22 }
 0x364   :  { %583 = vmatpush.bf16.msrb.mxu1 %v551_v46 }
 0x368   :  { %584 = vmatpush.bf16.msrb.mxu1 %v550_v39 }
 0x36c   :  { %585 = vmatpush.bf16.msrb.mxu1 %v549_v14 }
 0x370   :  { %586 = vmatpush.bf16.msrb.mxu1 %v1113_v17  ;;  %v909_v17 = vld [vmem:[%s1157_s8] ss:$0 sm:$0xff] }
 0x373   :  { %587 = vmatmul.bf16.vlgmr.msrb.gmra.mxu1 %v578_v8 }
 0x3f0   :  { %v588_v26 = vpop.f32.mrf.mxu1 }
 0x3f8   :  { %v590_v12 = vpop.f32.mrf.mxu1 }
 0x3f9   :  { %v593_v27 = vpack.c.bf16 %v590_v12, %v588_v26 }
 0x3fb   :  { %670 = vmatmul.bf16.vlgmr.msrb.gmra.mxu2 %v593_v27 }
 0x47e   :  { %v671_v16 = vpop.f32.mrf.mxu2 }
 0x47f   :  { %v672_v28 = vadd.f32 %v909_v17, %v671_v16 }
 0x481   :  { %676 = vmax.xlane.f32.xlu0 %v672_v28 }
 0x486   :  { %v673_v29 = vpop.f32.mrf.mxu2 }
 0x487   :  { %v674_v30 = vadd.f32 %v909_v17, %v673_v29 }
 0x489   :  { %678 = vmax.xlane.f32.xlu0 %v674_v30 }
 0x4f4   :  { %v677_v31 = vpop.xlane.xlu0 %676 }
 0x4f5   :  { %v680_v32 = vsub.f32 %v672_v28, %v677_v31 }
 0x4f7   :  { %v682_v14 = vmul.f32 1.442695, %v680_v32 }
 0x4f9   :  { %910 = vpow2.f32 %v682_v14 }
 0x4fc   :  { %v679_v33 = vpop.xlane.xlu0 %678 }
 0x4fd   :  { %v681_v34 = vsub.f32 %v674_v30, %v679_v33 }
 0x4ff   :  { %v911_v35 = vpop.eup %910  ;;  %v684_v36 = vmul.f32 1.442695, %v681_v34 }
 0x500   :  { %686 = vadd.xlane.f32.xlu1 %v911_v35 }
 0x501   :  { %912 = vpow2.f32 %v684_v36 }
 0x507   :  { %v913_v37 = vpop.eup %912 }
 0x508   :  { %688 = vadd.xlane.f32.xlu1 %v913_v37 }
 0x573   :  { %v687_v38 = vpop.xlane.xlu1 %686 }
 0x574   :  { %914 = vlog2.f32 %v687_v38 }
 0x57a   :  { %v915_v39 = vpop.eup %914 }
 0x57b   :  { %v691_v40 = vmul.f32 0.6931472, %v915_v39  ;;  %v689_v41 = vpop.xlane.xlu1 %688 }
 0x57c   :  { %916 = vlog2.f32 %v689_v41 }
 0x57d   :  { %v694_v42 = vsub.f32 %v680_v32, %v691_v40 }
 0x57f   :  { %696 = vst [vmem:[%s1158_s9] sm:$0xff] %v694_v42 }
 0x582   :  { %v917_v43 = vpop.eup %916 }
 0x583   :  { %v693_v44 = vmul.f32 0.6931472, %v917_v43 }
 0x585   :  { %v695_v45 = vsub.f32 %v681_v34, %v693_v44 }
 0x587   :  { %697 = vst [vmem:[%s1158_s9 + $0x8] sm:$0xff] %v695_v45 }

</bundles_post_ra>
